<compile_context>
chip_gen: v6e
topology: v6e:2x2x1
jax: 0.10.0
libtpu: 0.0.40
codegen_flags: <defaults>
</compile_context>

<pallas_src>
import functools

import jax
import jax.numpy as jnp
from jax.experimental import pallas as pl
from jax.experimental.pallas import tpu as pltpu


def _round_up(x, m):
    return (x + m - 1) // m * m


def _simsiam_kernel(p1_ref, z1_ref, p2_ref, z2_ref, out_ref, *,
                    batch, tile_rows, mask_tail):
    # Each input ref is a (tile_rows, D) tile in its native dtype; upcast to
    # f32 right after load and keep all accumulation in f32 (mandatory on
    # v5e, which has no bf16 VPU).
    p1 = p1_ref[...].astype(jnp.float32)
    z1 = z1_ref[...].astype(jnp.float32)
    p2 = p2_ref[...].astype(jnp.float32)
    z2 = z2_ref[...].astype(jnp.float32)

    # eps semantics: cos = dot / max(||a||*||b||, 1e-8)
    #              = dot * rsqrt(max(||a||^2 * ||b||^2, 1e-16))
    eps2 = jnp.float32(1e-16)

    # cos(p1_i, z2_i)
    d_a = jnp.sum(p1 * z2, axis=-1, keepdims=True)            # [TB, 1]
    n_p1 = jnp.sum(p1 * p1, axis=-1, keepdims=True)
    n_z2 = jnp.sum(z2 * z2, axis=-1, keepdims=True)
    cos_a = d_a * jax.lax.rsqrt(jnp.maximum(n_p1 * n_z2, eps2))   # EUP rsqrt

    # cos(p2_i, z1_i)
    d_b = jnp.sum(p2 * z1, axis=-1, keepdims=True)
    n_p2 = jnp.sum(p2 * p2, axis=-1, keepdims=True)
    n_z1 = jnp.sum(z1 * z1, axis=-1, keepdims=True)
    cos_b = d_b * jax.lax.rsqrt(jnp.maximum(n_p2 * n_z1, eps2))

    contrib = cos_a + cos_b                                     # [TB, 1]
    if mask_tail:
        # Rows past the true batch in the last (ragged) tile hold garbage that
        # may be NaN/Inf -> select them out (never multiply-by-zero).
        row = (pl.program_id(0) * tile_rows
               + jax.lax.broadcasted_iota(jnp.int32, (tile_rows, 1), 0))
        contrib = jnp.where(row < batch, contrib, jnp.float32(0.0))

    total = jnp.sum(contrib)                                    # scalar partial
    # One lane/sublane-aligned vreg per tile (avoids sub-(8,128) blocks).
    out_ref[...] = jnp.broadcast_to(jnp.reshape(total, (1, 1, 1)), (1, 8, 128))


def _choose_tile(b, d, itemsize):
    """Pick (tile_rows, num_tiles) sized by bytes-per-grid-step."""
    # Sublane packing of the input dtype: 8 rows for 32-bit, 16 for 16-bit, ...
    sub = max(8, 32 // max(1, itemsize))
    if b <= sub:
        # Single tile whose row-block equals the full array dim (always legal).
        return b, 1

    dp = _round_up(d, 128)                 # lane-padded VMEM footprint per row
    target_bytes = 8 << 20                 # ~8 MiB combined input per step
    tb = target_bytes // (4 * dp * itemsize)
    tb = max(sub, min(tb, 1024))
    tb = _round_up(tb, sub)

    if tb >= b:
        # Whole batch would be one tile: split into two row tiles so both of
        # v7x's TensorCores get work on the "parallel" grid axis.
        tb = _round_up(pl.cdiv(b, 2), sub)

    # Rebalance so the tiles are (nearly) even.
    num_tiles = pl.cdiv(b, tb)
    tb = min(_round_up(pl.cdiv(b, num_tiles), sub), _round_up(b, sub))
    num_tiles = pl.cdiv(b, tb)
    return tb, num_tiles


def simsiam_loss(p1, z1, p2, z2):
    """SimSiam loss. p1, z1, p2, z2: [B, D] (any float dtype). Returns f32."""
    b, d = p1.shape
    itemsize = jnp.dtype(p1.dtype).itemsize
    tb, num_tiles = _choose_tile(b, d, itemsize)
    mask_tail = (b % tb) != 0

    # Double-buffered input footprint + small headroom; >= v5e's 16 MiB
    # default, comfortably below v7x's 64 MiB physical VMEM.
    dp = _round_up(d, 128)
    vmem_needed = 2 * 4 * tb * dp * itemsize + (2 << 20)
    vmem_limit = int(min(max(vmem_needed, 32 << 20), 48 << 20))

    row_spec = pl.BlockSpec((tb, d), lambda i: (i, 0))
    kernel = functools.partial(_simsiam_kernel, batch=b, tile_rows=tb,
                               mask_tail=mask_tail)

    partials = pl.pallas_call(
        kernel,
        out_shape=jax.ShapeDtypeStruct((num_tiles, 8, 128), jnp.float32),
        grid=(num_tiles,),
        in_specs=[row_spec, row_spec, row_spec, row_spec],
        out_specs=pl.BlockSpec((1, 8, 128), lambda i: (i, 0, 0)),
        compiler_params=pltpu.CompilerParams(
            dimension_semantics=("parallel",),
            vmem_limit_bytes=vmem_limit),
    )(p1, z1, p2, z2)

    # Mean over the true batch, scaled by -0.5 (masked rows contributed 0).
    return -0.5 * jnp.sum(partials[:, 0, 0]) / jnp.float32(b)


def _simsiam_ref(p1, z1, p2, z2):
    """Pure-JAX reference mirroring the PyTorch SimSiamLoss module."""
    def cos(a, b):
        a = a.astype(jnp.float32)
        b = b.astype(jnp.float32)
        num = jnp.sum(a * b, axis=-1)
        den = jnp.maximum(
            jnp.linalg.norm(a, axis=-1) * jnp.linalg.norm(b, axis=-1), 1e-8)
        return num / den

    loss = -0.5 * (cos(p1, z2) + cos(p2, z1))
    return jnp.mean(loss)


if __name__ == "__main__":
    key = jax.random.PRNGKey(0)
    k1, k2, k3, k4 = jax.random.split(key, 4)
    B, D = 8, 32
    p1 = jax.random.normal(k1, (B, D), dtype=jnp.float32)
    z1 = jax.random.normal(k2, (B, D), dtype=jnp.float32)
    p2 = jax.random.normal(k3, (B, D), dtype=jnp.float32)
    z2 = jax.random.normal(k4, (B, D), dtype=jnp.float32)

    loss = jax.block_until_ready(simsiam_loss(p1, z1, p2, z2))
    ref = jax.block_until_ready(_simsiam_ref(p1, z1, p2, z2))

    assert jnp.isfinite(loss), f"non-finite loss: {loss}"
    assert jnp.allclose(loss, ref, rtol=1e-5, atol=1e-5), f"{loss} vs {ref}"

    # Ragged / larger shape exercise (tail masking + multi-tile grid).
    B2, D2 = 37, 96
    q1 = jax.random.normal(k1, (B2, D2), dtype=jnp.float32)
    y1 = jax.random.normal(k2, (B2, D2), dtype=jnp.float32)
    q2 = jax.random.normal(k3, (B2, D2), dtype=jnp.float32)
    y2 = jax.random.normal(k4, (B2, D2), dtype=jnp.float32)
    loss2 = jax.block_until_ready(simsiam_loss(q1, y1, q2, y2))
    ref2 = jax.block_until_ready(_simsiam_ref(q1, y1, q2, y2))
    assert jnp.allclose(loss2, ref2, rtol=1e-5, atol=1e-5), f"{loss2} vs {ref2}"

    print("KERNEL_OK")
</pallas_src>

<mosaic_0001>
module attributes {stable_mosaic.version = 11 : i64} {
  func.func @_simsiam_kernel(%arg0: i32, %arg1: memref<8x32xf32, #tpu.memory_space<vmem>>, %arg2: memref<8x32xf32, #tpu.memory_space<vmem>>, %arg3: memref<8x32xf32, #tpu.memory_space<vmem>>, %arg4: memref<8x32xf32, #tpu.memory_space<vmem>>, %arg5: memref<1x8x128xf32, #tpu.memory_space<vmem>>) attributes {dimension_semantics = [#tpu.dimension_semantics<parallel>], iteration_bounds = array<i64: 1>, scalar_prefetch = 0 : i64, scratch_operands = 0 : i64, tpu.core_type = #tpu.core_type<tc>, window_params = [{transform_indices = @transform_0, window_bounds = array<i64: 8, 32>}, {transform_indices = @transform_1, window_bounds = array<i64: 8, 32>}, {transform_indices = @transform_2, window_bounds = array<i64: 8, 32>}, {transform_indices = @transform_3, window_bounds = array<i64: 8, 32>}, {transform_indices = @transform_4, window_bounds = array<i64: 1, 8, 128>}]} {
    %c0 = arith.constant 0 : index
    %c0_0 = arith.constant 0 : index
    %0 = vector.load %arg1[%c0, %c0_0] : memref<8x32xf32, #tpu.memory_space<vmem>>, vector<8x32xf32>
    %c0_1 = arith.constant 0 : index
    %c0_2 = arith.constant 0 : index
    %1 = vector.load %arg2[%c0_1, %c0_2] : memref<8x32xf32, #tpu.memory_space<vmem>>, vector<8x32xf32>
    %c0_3 = arith.constant 0 : index
    %c0_4 = arith.constant 0 : index
    %2 = vector.load %arg3[%c0_3, %c0_4] : memref<8x32xf32, #tpu.memory_space<vmem>>, vector<8x32xf32>
    %c0_5 = arith.constant 0 : index
    %c0_6 = arith.constant 0 : index
    %3 = vector.load %arg4[%c0_5, %c0_6] : memref<8x32xf32, #tpu.memory_space<vmem>>, vector<8x32xf32>
    %4 = arith.mulf %0, %3 : vector<8x32xf32>
    %cst = arith.constant dense<0.000000e+00> : vector<8xf32>
    %5 = vector.multi_reduction <add>, %4, %cst [1] : vector<8x32xf32> to vector<8xf32>
    %6 = vector.shape_cast %5 : vector<8xf32> to vector<8x1xf32>
    %7 = arith.mulf %0, %0 : vector<8x32xf32>
    %cst_7 = arith.constant dense<0.000000e+00> : vector<8xf32>
    %8 = vector.multi_reduction <add>, %7, %cst_7 [1] : vector<8x32xf32> to vector<8xf32>
    %9 = vector.shape_cast %8 : vector<8xf32> to vector<8x1xf32>
    %10 = arith.mulf %3, %3 : vector<8x32xf32>
    %cst_8 = arith.constant dense<0.000000e+00> : vector<8xf32>
    %11 = vector.multi_reduction <add>, %10, %cst_8 [1] : vector<8x32xf32> to vector<8xf32>
    %12 = vector.shape_cast %11 : vector<8xf32> to vector<8x1xf32>
    %13 = arith.mulf %9, %12 : vector<8x1xf32>
    %cst_9 = arith.constant 1.000000e-16 : f32
    %14 = vector.broadcast %cst_9 : f32 to vector<8x1xf32>
    %15 = arith.maximumf %13, %14 : vector<8x1xf32>
    %16 = math.rsqrt %15 : vector<8x1xf32>
    %17 = arith.mulf %6, %16 : vector<8x1xf32>
    %18 = arith.mulf %2, %1 : vector<8x32xf32>
    %cst_10 = arith.constant dense<0.000000e+00> : vector<8xf32>
    %19 = vector.multi_reduction <add>, %18, %cst_10 [1] : vector<8x32xf32> to vector<8xf32>
    %20 = vector.shape_cast %19 : vector<8xf32> to vector<8x1xf32>
    %21 = arith.mulf %2, %2 : vector<8x32xf32>
    %cst_11 = arith.constant dense<0.000000e+00> : vector<8xf32>
    %22 = vector.multi_reduction <add>, %21, %cst_11 [1] : vector<8x32xf32> to vector<8xf32>
    %23 = vector.shape_cast %22 : vector<8xf32> to vector<8x1xf32>
    %24 = arith.mulf %1, %1 : vector<8x32xf32>
    %cst_12 = arith.constant dense<0.000000e+00> : vector<8xf32>
    %25 = vector.multi_reduction <add>, %24, %cst_12 [1] : vector<8x32xf32> to vector<8xf32>
    %26 = vector.shape_cast %25 : vector<8xf32> to vector<8x1xf32>
    %27 = arith.mulf %23, %26 : vector<8x1xf32>
    %cst_13 = arith.constant 1.000000e-16 : f32
    %28 = vector.broadcast %cst_13 : f32 to vector<8x1xf32>
    %29 = arith.maximumf %27, %28 : vector<8x1xf32>
    %30 = math.rsqrt %29 : vector<8x1xf32>
    %31 = arith.mulf %20, %30 : vector<8x1xf32>
    %32 = arith.addf %17, %31 : vector<8x1xf32>
    %33 = vector.shape_cast %32 : vector<8x1xf32> to vector<1x8x1xf32>
    %cst_14 = arith.constant dense<0.000000e+00> : vector<1xf32>
    %34 = vector.multi_reduction <add>, %33, %cst_14 [1, 2] : vector<1x8x1xf32> to vector<1xf32>
    %35 = vector.shape_cast %34 : vector<1xf32> to vector<1x1x1xf32>
    %36 = vector.extract %35[0, 0, 0] : f32 from vector<1x1x1xf32>
    %37 = vector.broadcast %36 : f32 to vector<1x1x1xf32>
    %38 = vector.shape_cast %37 : vector<1x1x1xf32> to vector<1x1x1xf32>
    %39 = vector.broadcast %38 : vector<1x1x1xf32> to vector<1x8x128xf32>
    %c0_15 = arith.constant 0 : index
    %c0_16 = arith.constant 0 : index
    %c0_17 = arith.constant 0 : index
    %40 = vector.load %arg5[%c0_15, %c0_16, %c0_17] : memref<1x8x128xf32, #tpu.memory_space<vmem>>, vector<1x8x128xf32>
    tpu.vector_store %arg5[%c0_15, %c0_16, %c0_17], %39 {strides = array<i32>} : memref<1x8x128xf32, #tpu.memory_space<vmem>>, vector<1x8x128xf32>,
    return
  }
  func.func @transform_0(%arg0: i32) -> (i32, i32) {
    %c0_i32 = arith.constant 0 : i32
    %c0_i32_0 = arith.constant 0 : i32
    return %arg0, %c0_i32 : i32, i32
  }
  func.func @transform_1(%arg0: i32) -> (i32, i32) {
    %c0_i32 = arith.constant 0 : i32
    %c0_i32_0 = arith.constant 0 : i32
    return %arg0, %c0_i32 : i32, i32
  }
  func.func @transform_2(%arg0: i32) -> (i32, i32) {
    %c0_i32 = arith.constant 0 : i32
    %c0_i32_0 = arith.constant 0 : i32
    return %arg0, %c0_i32 : i32, i32
  }
  func.func @transform_3(%arg0: i32) -> (i32, i32) {
    %c0_i32 = arith.constant 0 : i32
    %c0_i32_0 = arith.constant 0 : i32
    return %arg0, %c0_i32 : i32, i32
  }
  func.func @transform_4(%arg0: i32) -> (i32, i32, i32) {
    %c0_i32 = arith.constant 0 : i32
    %c0_i32_0 = arith.constant 0 : i32
    %c0_i32_1 = arith.constant 0 : i32
    return %arg0, %c0_i32, %c0_i32_0 : i32, i32, i32
  }
}

</mosaic_0001>

<bundles_post_ra>
// kernel: tpu_custom_call.1
= control target key start
LH: loop header
LB: loop body
LE: loop exit
PB: predicated region body
PF: predicated region fallthrough
CT: control target
= control target key end

     0   :  { %9 = vsyncpa [#allocation3], 0  ;;  %s303_s0 = inlined_call_operand.hbm [shape: f32[8,32], index: 0, kind: input, shape index: {}]   ;;  %s304_s1 = inlined_call_operand.hbm [shape: f32[8,32], index: 1, kind: input, shape index: {}]   ;;  %s305_s2 = inlined_call_operand.hbm [shape: f32[8,32], index: 2, kind: input, shape index: {}]   ;;  %s306_s3 = inlined_call_operand.hbm [shape: f32[8,32], index: 3, kind: input, shape index: {}]   ;;  %s307_s4 = inlined_call_operand.hbm [shape: f32[1,8,128], index: 4, kind: output, shape index: {}]  }
   0x1   :  { %10 = vsyncpa [#allocation6], 0 }
   0x2   :  { %11 = vsyncpa [#allocation9], 0 }
   0x3   :  { %12 = vsyncpa [#allocation4], 0  ;;  %s252_s15 = smov [#allocation5]   ;;  %s253_s17 = smov [#allocation2]  }
   0x4   :  { %s29_s16 = sshll.u32 %s252_s15, 4  ;;  %s19_s18 = sshll.u32 %s253_s17, 4  ;;  %s30_s16 = int_to_ptr.vmem [resolvable:$true] %s29_s16  ;;  %s20_s18 = int_to_ptr.vmem [resolvable:$true] %s19_s18 }
   0x5   :  { %s152_s19 = scalar_lea.vmem %s30_s16, 128  ;;  %p157_p1 = scmp.lt.s32.totalorder %s30_s16, %s30_s16 }
   0x6   :  { %p153_p0 = scmp.ne.s32.totalorder %s30_s16, %s152_s19  ;;  %p158_p2 = scmp.lt.s32.totalorder %s152_s19, %s152_s19 }
   0x8   :  { %p159_p3 = por %p158_p2, %p157_p1 }
   0xa   :  { %p160_p4 = pnand %p159_p3, %p153_p0 }
   0xc   :  { %163 = shalt.err (!%p160_p4)
}
   0xd   :  { %32 = dma.hbm_to_vmem [thread:$0]  %s304_s1, 128, %s30_s16, [#allocation6]  }
   0xe   :  { %s172_s22 = scalar_lea.vmem %s20_s18, 128  ;;  %p177_p6 = scmp.lt.s32.totalorder %s20_s18, %s20_s18 }
   0xf   :  { %p173_p5 = scmp.ne.s32.totalorder %s20_s18, %s172_s22  ;;  %p178_p7 = scmp.lt.s32.totalorder %s172_s22, %s172_s22 }
  0x11   :  { %p179_p8 = por %p178_p7, %p177_p6 }
  0x13   :  { %p180_p9 = pnand %p179_p8, %p173_p5 }
  0x15   :  { %183 = shalt.err (!%p180_p9)
}
  0x16   :  { %22 = dma.hbm_to_vmem [thread:$0]  %s303_s0, 128, %s20_s18, [#allocation3]  }
  0x17   :  { %s254_s25 = smov [#allocation7]   ;;  %s255_s27 = smov [#allocation8]  }
  0x18   :  { %s39_s26 = sshll.u32 %s254_s25, 4  ;;  %s49_s28 = sshll.u32 %s255_s27, 4  ;;  %s40_s26 = int_to_ptr.vmem [resolvable:$true] %s39_s26  ;;  %s50_s28 = int_to_ptr.vmem [resolvable:$true] %s49_s28 }
  0x19   :  { %s192_s29 = scalar_lea.vmem %s40_s26, 128  ;;  %p197_p11 = scmp.lt.s32.totalorder %s40_s26, %s40_s26 }
  0x1a   :  { %p193_p10 = scmp.ne.s32.totalorder %s40_s26, %s192_s29  ;;  %p198_p12 = scmp.lt.s32.totalorder %s192_s29, %s192_s29 }
  0x1c   :  { %p199_p13 = por %p198_p12, %p197_p11 }
  0x1e   :  { %p200_p0 = pnand %p199_p13, %p193_p10 }
  0x20   :  { %203 = shalt.err (!%p200_p0)
}
  0x21   :  { %42 = dma.hbm_to_vmem [thread:$0]  %s305_s2, 128, %s40_s26, [#allocation6]  }
  0x22   :  { %s212_s5 = scalar_lea.vmem %s50_s28, 128  ;;  %p217_p2 = scmp.lt.s32.totalorder %s50_s28, %s50_s28 }
  0x23   :  { %p213_p1 = scmp.ne.s32.totalorder %s50_s28, %s212_s5  ;;  %p218_p3 = scmp.lt.s32.totalorder %s212_s5, %s212_s5 }
  0x25   :  { %p219_p4 = por %p218_p3, %p217_p2 }
  0x27   :  { %p220_p5 = pnand %p219_p4, %p213_p1 }
  0x29   :  { %223 = shalt.err (!%p220_p5)
}
  0x2a   :  { %52 = dma.hbm_to_vmem [thread:$0]  %s306_s3, 128, %s50_s28, [#allocation9]  }
  0x2b   :  { %244 = dma.done.wait [#allocation3], 128  }
  0x2c   :  { %245 = vsyncadd [#allocation3], 4294967168 }
  0x2d   :  { %246 = dma.done.wait [#allocation6], 256  }
  0x2e   :  { %247 = vsyncadd [#allocation6], 4294967040 }
  0x2f   :  { %248 = dma.done.wait [#allocation9], 128  }
  0x30   :  { %249 = vsyncadd [#allocation9], 4294967168  ;;  %v67_v0 = vld [vmem:[#allocation7] sm:$0xff]  ;;  %vm70_vm0 = vcmask 261120   ;;  %v65_v1 = vld [vmem:[#allocation2] sm:$0xff]  ;;  %vm103_vm1 = vcmask 7168  }
  0x31   :  { %v66_v2 = vld [vmem:[#allocation5] sm:$0xff]  ;;  %v90_v3 = vmul.f32 %v67_v0, %v67_v0  ;;  %v74_v4 = vmul.f32 %v65_v1, %v65_v1  ;;  %v68_v6 = vld [vmem:[#allocation8] sm:$0xff]  ;;  %s256_s2 = smov [#allocation10]  }
  0x32   :  { %v94_v5 = vmul.f32 %v66_v2, %v66_v2  ;;  %v78_v7 = vmul.f32 %v68_v6, %v68_v6  ;;  %v86_v12 = vmul.f32 %v67_v0, %v66_v2  ;;  %v69_v13 = vmul.f32 %v68_v6, %v65_v1  ;;  %s122_s3 = sshll.u32 %s256_s2, 4  ;;  %s123_s3 = int_to_ptr.vmem [resolvable:$true] %s122_s3 }
  0x33   :  { %v91_v8 = vsel %vm70_vm0, %v90_v3, 0.0  ;;  %v75_v9 = vsel %vm70_vm0, %v74_v4, 0.0  ;;  %s224_s8 = scalar_lea.vmem %s123_s3, 128  ;;  %p229_p7 = scmp.lt.s32.totalorder %s123_s3, %s123_s3 }
  0x34   :  { %92 = vadd.xlane.f32.xlu1 %v91_v8  ;;  %76 = vadd.xlane.f32.xlu0 %v75_v9  ;;  %v95_v10 = vsel %vm70_vm0, %v94_v5, 0.0  ;;  %v79_v11 = vsel %vm70_vm0, %v78_v7, 0.0  ;;  %v87_v14 = vsel %vm70_vm0, %v86_v12, 0.0  ;;  %v71_v15 = vsel %vm70_vm0, %v69_v13, 0.0  ;;  %p225_p6 = scmp.ne.s32.totalorder %s123_s3, %s224_s8  ;;  %p230_p8 = scmp.lt.s32.totalorder %s224_s8, %s224_s8 }
  0x36   :  { %p231_p9 = por %p230_p8, %p229_p7 }
  0x38   :  { %96 = vadd.xlane.f32.xlu1 %v95_v10  ;;  %80 = vadd.xlane.f32.xlu0 %v79_v11  ;;  %p232_p10 = pnand %p231_p9, %p225_p6 }
  0x3c   :  { %88 = vadd.xlane.f32.xlu1 %v87_v14  ;;  %72 = vadd.xlane.f32.xlu0 %v71_v15 }
  0xbd   :  { %v93_v16 = vpop.xlane.xlu1 %92  ;;  %v77_v17 = vpop.xlane.xlu0 %76 }
  0xc1   :  { %v97_v18 = vpop.xlane.xlu1 %96  ;;  %v81_v19 = vpop.xlane.xlu0 %80 }
  0xc2   :  { %v98_v20 = vmul.f32 %v97_v18, %v93_v16  ;;  %v82_v21 = vmul.f32 %v81_v19, %v77_v17 }
  0xc4   :  { %v99_v22 = vmax.f32 %v98_v20, 1e-16  ;;  %v83_v23 = vmax.f32 %v82_v21, 1e-16 }
  0xc5   :  { %v89_v24 = vpop.xlane.xlu1 %88  ;;  %v73_v25 = vpop.xlane.xlu0 %72 }
  0xc6   :  { %140 = vrsqrt.f32 %v99_v22 }
  0xc7   :  { %142 = vrsqrt.f32 %v83_v23 }
  0xd3   :  { %v141_v26 = vpop.eup %140 }
  0xd4   :  { %v143_v27 = vpop.eup %142  ;;  %v101_v28 = vmul.f32 %v141_v26, %v89_v24 }
  0xd5   :  { %v85_v29 = vmul.f32 %v143_v27, %v73_v25 }
  0xd7   :  { %v102_v30 = vadd.f32 %v101_v28, %v85_v29 }
  0xd9   :  { %v104_v31 = vsel %vm103_vm1, %v102_v30, 0.0 }
  0xda   :  { %105 = vadd.xlane.f32.xlu0 %v104_v31 }
 0x163   :  { %v106_v32 = vpop.xlane.xlu0 %105 }
 0x164   :  { %v107_v33 = vrot.slane %v106_v32, 4 }
 0x166   :  { %v108_v34 = vadd.f32 %v107_v33, %v106_v32 }
 0x168   :  { %v109_v35 = vrot.slane %v108_v34, 2 }
 0x16a   :  { %v110_v36 = vadd.f32 %v109_v35, %v108_v34 }
 0x16c   :  { %v111_v37 = vrot.slane %v110_v36, 1 }
 0x16e   :  { %v112_v38 = vadd.f32 %v111_v37, %v110_v36 }
 0x170   :  { %133 = vpush %v112_v38 }
 0x1a1   :  { %s134_s7 = spop %133 }
 0x1a2   :  { %v114_v39 = vstv %s134_s7 }
 0x1a3   :  { %115 = vst [vmem:[#allocation10] sm:$0xff] %v114_v39 }
 0x1a4   :  { %235 = shalt.err (!%p232_p10)
}
 0x1a5   :  { %125 = dma.vmem_to_hbm [thread:$0]  %s123_s3, 128, %s307_s4, [#allocation4]  }
 0x1a6   :  { %250 = dma.done.wait [#allocation4], 128  }
 0x1a7   :  { %251 = vsyncadd [#allocation4], 4294967168 }
 0x1a8   :  { %129 = vsyncpa [#allocation3], 1 }
 0x1a9   :  { %130 = vsyncpa [#allocation6], 1 }
 0x1aa   :  { %131 = vsyncpa [#allocation9], 1 }
 0x1ab   :  { %132 = vsyncpa [#allocation4], 1 }

</bundles_post_ra>
